<compile_context>
chip_gen: v7x
topology: tpu7x:2x2x1
jax: 0.10.0
libtpu: 0.0.40
codegen_flags: <defaults>
</compile_context>

<pallas_src>
import jax
import jax.numpy as jnp
from jax.experimental import pallas as pl
from jax.experimental.pallas import tpu as pltpu

BN_EPS = 1e-5
_MAX_TM = 2048          # lane-tile cap; big tiles amortize ~0.35us/step overhead


# ----------------------------- Pallas kernel --------------------------------
def _conv1x1_bn_kernel(x_ref, w_ref, sb_ref, o_ref):
    # x_ref: (Cin, TM) f32/bf16   w_ref: (TN, Cin) bf16
    # sb_ref: (TN, 2) f32  [:,0]=bn_scale  [:,1]=bn_bias   o_ref: (TN, TM)
    xv = x_ref[...].astype(jnp.bfloat16)                   # no-op if already bf16
    acc = jnp.dot(w_ref[...], xv, preferred_element_type=jnp.float32)
    sb = sb_ref[...]
    o_ref[...] = (acc * sb[:, 0:1] + sb[:, 1:2]).astype(o_ref.dtype)


# --------------------------- tiling / VMEM sizing ----------------------------
def _vmem_budget():
    """(vmem_limit_bytes for CompilerParams, byte budget for the tile footprint)."""
    try:
        cap = pltpu.get_tpu_info().vmem_capacity_bytes     # 128 MiB v5e/v6e, 64 MiB v7x
    except Exception:
        cap = 64 * 1024 * 1024
    limit = int(min(cap // 2, 64 * 1024 * 1024))
    return limit, int(limit * 3 // 4)                      # headroom for Mosaic scratch


def _pick_tiles(n, cin, cout, hw, x_itemsize, out_itemsize, budget):
    """Choose (tn, tm): Cout sublane tile and spatial lane tile."""

    def fixed_bytes(tn):
        # double-buffered bf16 weight block + lane-padded (tn,2)->(tn,128) f32 scale/bias
        return 2 * tn * cin * 2 + 2 * tn * 128 * 4

    # Cout tile: keep the whole weight resident in VMEM when it fits (fetched once).
    if fixed_bytes(cout) <= budget // 2:
        tn = cout
    else:
        tn = 512 if cout > 512 else cout                   # multiple of 8 fallback
        while tn > 8 and fixed_bytes(tn) > budget // 2:
            tn //= 2

    # Spatial tile: biggest multiple of 128 (or full extent) that fits the budget.
    per_col = 2 * cin * x_itemsize + 2 * tn * out_itemsize  # dbl-buffered x + out
    tm_max = (budget - fixed_bytes(tn)) // per_col
    tm_max = int(max(128, min(tm_max, _MAX_TM)))
    if hw <= tm_max:
        tm = hw                                            # full-extent lane block
    else:
        tm = (tm_max // 128) * 128

    # v7x has 2 TensorCores; with all-"parallel" semantics a 1-element grid
    # leaves one idle -> make sure we have >= 2 blocks when batch == 1.
    if n * pl.cdiv(hw, tm) * pl.cdiv(cout, tn) < 2 and hw > 128:
        tm = ((hw + 1) // 2 + 127) // 128 * 128
    return tn, tm


# ------------------------------- entry point ---------------------------------
def conv1x1_bn_nchw(x, w_bf16, scale_bias, out_dtype=None):
    """Fused 1x1 conv (no bias) + BatchNorm (eval mode), NCHW layout.

    x:          (N, Cin, H, W)   f32 or bf16
    w_bf16:     (Cout, Cin)      bf16 conv weight (unscaled)
    scale_bias: (Cout, 2)        f32: [:,0]=gamma/sqrt(var+eps), [:,1]=beta-mean*scale
    returns     (N, Cout, H, W)  out_dtype (default: x.dtype)
    """
    n, cin, h, w = x.shape
    cout = w_bf16.shape[0]
    hw = h * w
    out_dtype = x.dtype if out_dtype is None else jnp.dtype(out_dtype)
    x3 = x.reshape(n, cin, hw)

    vmem_limit, budget = _vmem_budget()
    tn, tm = _pick_tiles(n, cin, cout, hw, x3.dtype.itemsize,
                         jnp.dtype(out_dtype).itemsize, budget)
    num_i = pl.cdiv(hw, tm)      # spatial tiles (ragged tail allowed, no HBM pad)
    num_j = pl.cdiv(cout, tn)    # cout tiles (1 when the weight is resident)
    grid = (n, num_i, num_j)     # j innermost: x block (b,0,i) constant across it

    # HBM traffic the kernel actually generates (activation read exactly once).
    w_fetches = 1 if num_j == 1 else n * num_i * num_j
    flops = 2 * n * hw * cin * cout
    bytes_accessed = int(x3.size * x3.dtype.itemsize
                         + w_fetches * tn * cin * 2
                         + n * cout * hw * jnp.dtype(out_dtype).itemsize
                         + cout * 2 * 4)

    # NOTE: layers with HW < 128 produce lane widths below 128 (masked stores);
    # they are tiny here, but a lane-dense (Cin, N*HW) slab would fix the cliff.
    out = pl.pallas_call(
        _conv1x1_bn_kernel,
        out_shape=jax.ShapeDtypeStruct((n, cout, hw), out_dtype),
        grid=grid,
        in_specs=[
            pl.BlockSpec((None, cin, tm), lambda b, i, j: (b, 0, i)),
            pl.BlockSpec((tn, cin), lambda b, i, j: (j, 0)),
            pl.BlockSpec((tn, 2), lambda b, i, j: (j, 0)),
        ],
        out_specs=pl.BlockSpec((None, tn, tm), lambda b, i, j: (b, j, i)),
        compiler_params=pltpu.CompilerParams(
            dimension_semantics=("parallel", "parallel", "parallel"),
            vmem_limit_bytes=vmem_limit,
        ),
        cost_estimate=pl.CostEstimate(
            flops=flops, transcendentals=0, bytes_accessed=bytes_accessed),
    )(x3, w_bf16, scale_bias)

    return out.reshape(n, cout, h, w)


# ------------------------------ glue / module --------------------------------
def _avg_pool_2x2(x):
    # AvgPool2d(kernel_size=2, stride=2, padding=0), floor mode.  x: NCHW
    n, c, h, w = x.shape
    x = x[:, :, : (h // 2) * 2, : (w // 2) * 2]
    x = x.reshape(n, c, h // 2, 2, w // 2, 2)
    return x.mean(axis=(3, 5))


class ShortCutPallas:
    """Pallas implementation of torchocr DetResNetvd ShortCut (BN eval mode)."""

    def __init__(self, in_channels, out_channels, stride, if_first=False,
                 name=None, output_dtype=None, key=None):
        self.in_channels = in_channels
        self.out_channels = out_channels
        self.stride = stride
        self.if_first = if_first
        self.name = name
        self.output_dtype = output_dtype   # e.g. jnp.bfloat16 when the residual add is bf16

        if in_channels != out_channels or stride != 1:
            self.mode = "conv" if if_first else "pool_conv"
        elif if_first:
            self.mode = "conv"
        else:
            self.mode = None

        if self.mode is not None:
            key = jax.random.PRNGKey(0) if key is None else key
            kw, kg, kb, km, kv = jax.random.split(key, 5)
            # Conv2d weight (Cout, Cin, 1, 1) stored as (Cout, Cin).
            self.w_f32 = jax.random.normal(kw, (out_channels, in_channels), jnp.float32) * 0.1
            self.gamma = 1.0 + 0.1 * jax.random.normal(kg, (out_channels,), jnp.float32)
            self.beta = 0.1 * jax.random.normal(kb, (out_channels,), jnp.float32)
            self.running_mean = 0.1 * jax.random.normal(km, (out_channels,), jnp.float32)
            self.running_var = jnp.abs(jax.random.normal(kv, (out_channels,), jnp.float32)) + 0.5
            self.scale = self.gamma / jnp.sqrt(self.running_var + BN_EPS)
            self.bias = self.beta - self.running_mean * self.scale
            # Weights stay unscaled bf16; BN scale/bias applied to the f32 accumulator.
            self.w_bf16 = self.w_f32.astype(jnp.bfloat16)
            self.scale_bias = jnp.stack([self.scale, self.bias], axis=1).astype(jnp.float32)

    def __call__(self, x):
        # x: NCHW float32 (or bfloat16 directly from the producer: halves read traffic)
        if self.mode is None:
            return x
        if self.mode == "pool_conv":
            # AvgPool2d(2,2) as one XLA pass with the bf16 cast fused into it.
            # TODO(synk): fuse the 2x2 avg-pool into the kernel (roll+add on idle
            #             VPU/XLU slots) to drop the pooled tensor's HBM round-trip.
            xs = _avg_pool_2x2(x).astype(jnp.bfloat16)
        elif self.stride != 1:
            # Strided 1x1 conv == spatial subsample; bf16 cast fused into the slice.
            # TODO(synk): fuse the stride-s subsample into the kernel DMA path /
            #             a strided lane slice so the skipped pixels never leave HBM.
            xs = x[:, :, ::self.stride, ::self.stride].astype(jnp.bfloat16)
        else:
            xs = x  # no wrapper pass; kernel casts to bf16 in-register
        out_dtype = x.dtype if self.output_dtype is None else self.output_dtype
        return conv1x1_bn_nchw(xs, self.w_bf16, self.scale_bias, out_dtype=out_dtype)


# ------------------------------ pure-JAX reference ---------------------------
def _reference(module, x):
    if module.mode is None:
        return x
    if module.mode == "pool_conv":
        xr = _avg_pool_2x2(x)
        s = 1
    else:
        xr = x
        s = module.stride
    w4 = module.w_f32.reshape(module.out_channels, module.in_channels, 1, 1)
    y = jax.lax.conv_general_dilated(
        xr, w4, window_strides=(s, s), padding="VALID",
        dimension_numbers=("NCHW", "OIHW", "NCHW"))
    return y * module.scale.reshape(1, -1, 1, 1) + module.bias.reshape(1, -1, 1, 1)


# ------------------------------------ main ------------------------------------
if __name__ == "__main__":
    key = jax.random.PRNGKey(0)
    kx1, kx2 = jax.random.split(key)
    x = jax.random.normal(kx1, (2, 4, 16, 16), jnp.float32)

    # Case 1: downsample shortcut, not first block -> AvgPool + 1x1 conv + BN
    m1 = ShortCutPallas(4, 8, stride=2, if_first=False, name="sc1",
                        key=jax.random.PRNGKey(1))
    y1 = jax.block_until_ready(m1(x))
    assert y1.shape == (2, 8, 8, 8)
    assert jnp.allclose(y1, _reference(m1, x), atol=5e-2, rtol=5e-2)

    # Case 2: downsample shortcut, first block -> strided 1x1 conv + BN
    m2 = ShortCutPallas(4, 8, stride=2, if_first=True, name="sc2",
                        key=jax.random.PRNGKey(2))
    y2 = jax.block_until_ready(m2(x))
    assert y2.shape == (2, 8, 8, 8)
    assert jnp.allclose(y2, _reference(m2, x), atol=5e-2, rtol=5e-2)

    # Case 3: identity shortcut
    m3 = ShortCutPallas(4, 4, stride=1, if_first=False, name="sc3")
    y3 = jax.block_until_ready(m3(x))
    assert y3.shape == x.shape
    assert jnp.allclose(y3, x)

    # Case 4: channel-change shortcut, stride 1, first block (f32 input path,
    # in-kernel bf16 cast, 128-multiple lane tiling, resident weights)
    x4 = jax.random.normal(kx2, (2, 32, 16, 16), jnp.float32)
    m4 = ShortCutPallas(32, 64, stride=1, if_first=True, name="sc4",
                        key=jax.random.PRNGKey(3))
    y4 = jax.block_until_ready(m4(x4))
    assert y4.shape == (2, 64, 16, 16)
    assert jnp.allclose(y4, _reference(m4, x4), atol=5e-2, rtol=5e-2)

    # Case 5: bf16 output path (residual add consumer in bf16 -> half the HBM write)
    m5 = ShortCutPallas(32, 64, stride=1, if_first=True, name="sc5",
                        output_dtype=jnp.bfloat16, key=jax.random.PRNGKey(3))
    y5 = jax.block_until_ready(m5(x4))
    assert y5.shape == (2, 64, 16, 16) and y5.dtype == jnp.bfloat16
    assert jnp.allclose(y5.astype(jnp.float32), _reference(m5, x4), atol=1e-1, rtol=1e-1)

    print("KERNEL_OK")
</pallas_src>

<mosaic_0001>
module attributes {stable_mosaic.version = 11 : i64} {
  func.func @_conv1x1_bn_kernel(%arg0: i32, %arg1: i32, %arg2: i32, %arg3: memref<1x4x64xbf16, #tpu.memory_space<vmem>>, %arg4: memref<8x4xbf16, #tpu.memory_space<vmem>>, %arg5: memref<8x2xf32, #tpu.memory_space<vmem>>, %arg6: memref<1x8x64xf32, #tpu.memory_space<vmem>>) attributes {dimension_semantics = [#tpu.dimension_semantics<parallel>, #tpu.dimension_semantics<parallel>, #tpu.dimension_semantics<parallel>], iteration_bounds = array<i64: 2, 1, 1>, scalar_prefetch = 0 : i64, scratch_operands = 0 : i64, tpu.core_type = #tpu.core_type<tc>, window_params = [{transform_indices = @transform_0, window_bounds = array<i64: 1, 4, 64>}, {transform_indices = @transform_1, window_bounds = array<i64: 8, 4>}, {transform_indices = @transform_2, window_bounds = array<i64: 8, 2>}, {transform_indices = @transform_3, window_bounds = array<i64: 1, 8, 64>}]} {
    %c0 = arith.constant 0 : index
    %c0_0 = arith.constant 0 : index
    %c0_1 = arith.constant 0 : index
    %0 = vector.load %arg3[%c0, %c0_0, %c0_1] : memref<1x4x64xbf16, #tpu.memory_space<vmem>>, vector<1x4x64xbf16>
    %1 = vector.shape_cast %0 : vector<1x4x64xbf16> to vector<4x64xbf16>
    %c0_2 = arith.constant 0 : index
    %c0_3 = arith.constant 0 : index
    %2 = vector.load %arg4[%c0_2, %c0_3] : memref<8x4xbf16, #tpu.memory_space<vmem>>, vector<8x4xbf16>
    %cst = arith.constant dense<0.000000e+00> : vector<8x64xf32>
    %3 = tpu.matmul %2, %1, %cst {dimension_numbers = #tpu.dot_dimension_numbers<[1], [0], [0], [1], [0, 0, 1, 1], [], []>} : vector<8x4xbf16>, vector<4x64xbf16>, vector<8x64xf32> -> vector<8x64xf32>
    %c0_4 = arith.constant 0 : index
    %c0_5 = arith.constant 0 : index
    %4 = vector.load %arg5[%c0_4, %c0_5] : memref<8x2xf32, #tpu.memory_space<vmem>>, vector<8x2xf32>
    %5 = vector.extract_strided_slice %4 {offsets = [0, 0], sizes = [8, 1], strides = [1, 1]} : vector<8x2xf32> to vector<8x1xf32>
    %6 = vector.broadcast %5 : vector<8x1xf32> to vector<8x64xf32>
    %7 = arith.mulf %3, %6 : vector<8x64xf32>
    %8 = vector.extract_strided_slice %4 {offsets = [0, 1], sizes = [8, 1], strides = [1, 1]} : vector<8x2xf32> to vector<8x1xf32>
    %9 = vector.broadcast %8 : vector<8x1xf32> to vector<8x64xf32>
    %10 = arith.addf %7, %9 : vector<8x64xf32>
    %c0_6 = arith.constant 0 : index
    %c0_7 = arith.constant 0 : index
    %c0_8 = arith.constant 0 : index
    %11 = vector.load %arg6[%c0_6, %c0_7, %c0_8] : memref<1x8x64xf32, #tpu.memory_space<vmem>>, vector<1x8x64xf32>
    %12 = vector.shape_cast %11 : vector<1x8x64xf32> to vector<8x64xf32>
    %13 = vector.shape_cast %10 : vector<8x64xf32> to vector<1x8x64xf32>
    tpu.vector_store %arg6[%c0_6, %c0_7, %c0_8], %13 {strides = array<i32>} : memref<1x8x64xf32, #tpu.memory_space<vmem>>, vector<1x8x64xf32>,
    return
  }
  func.func @transform_0(%arg0: i32, %arg1: i32, %arg2: i32) -> (i32, i32, i32) {
    %c0_i32 = arith.constant 0 : i32
    %c0_i32_0 = arith.constant 0 : i32
    return %arg0, %c0_i32, %arg1 : i32, i32, i32
  }
  func.func @transform_1(%arg0: i32, %arg1: i32, %arg2: i32) -> (i32, i32) {
    %c0_i32 = arith.constant 0 : i32
    %c0_i32_0 = arith.constant 0 : i32
    return %arg2, %c0_i32 : i32, i32
  }
  func.func @transform_2(%arg0: i32, %arg1: i32, %arg2: i32) -> (i32, i32) {
    %c0_i32 = arith.constant 0 : i32
    %c0_i32_0 = arith.constant 0 : i32
    return %arg2, %c0_i32 : i32, i32
  }
  func.func @transform_3(%arg0: i32, %arg1: i32, %arg2: i32) -> (i32, i32, i32) {
    %c0_i32 = arith.constant 0 : i32
    return %arg0, %arg2, %arg1 : i32, i32, i32
  }
}

</mosaic_0001>

<bundles_post_ra>
// kernel: tpu_custom_call.1
= control target key start
LH: loop header
LB: loop body
LE: loop exit
PB: predicated region body
PF: predicated region fallthrough
CT: control target
= control target key end

     0   :  { %8 = vsyncpa [#allocation3], 0  ;;  %s726_s0 = inlined_call_operand.vmem [shape: bf16[2,4,64], index: 0, kind: input, shape index: {}]   ;;  %s727_s1 = inlined_call_operand.vmem [shape: bf16[8,4], index: 1, kind: input, shape index: {}]   ;;  %s728_s2 = inlined_call_operand.vmem [shape: f32[8,2], index: 2, kind: input, shape index: {}]   ;;  %s729_s3 = inlined_call_operand.hbm [shape: f32[2,8,64], index: 3, kind: output, shape index: {}]  }
   0x1   :  { %10 = vsyncpa [#allocation3 + $0x1], 0  ;;  %s608_s12 = smov 0   ;;  %s610_s13 = smov 0  }
   0x2   :  { %s612_s14 = smov 0   ;;  %s614_s15 = smov 0  }
   0x3   :  { %s616_s16 = smov 0   ;;  %s618_s17 = smov 0  }
   0x4 LB: > { %s420_s18 = sadd.s32 4294967295, %s581_s17   ;;  %s421_s19 = sadd.s32 4294967294, %s581_s17   ;;  %s581_s17 = sphi %s618_s17, %s16_s17   ;;  %s577_s16 = sphi %s616_s16, %s736_s16   ;;  %s573_s15 = sphi %s614_s15, %s735_s15   ;;  %s569_s14 = sphi %s612_s14, %s734_s14   ;;  %s565_s13 = sphi %s610_s13, %s733_s13   ;;  %s561_s12 = sphi %s608_s12, %s732_s12  }
   0x5   : > { %s35_s20 = sadd.s32 1, %s577_s16  ;;  %s126_s21 = sadd.s32 1, %s569_s14 }
   0x6   : > { %p37_p0 = scmp.ge.s32.totalorder %s35_s20, 2  ;;  %p136_p1 = scmp.ne.s32.totalorder %s569_s14, %s565_s13 }
   0x7   : > { %p137_p2 = scmp.eq.s32.totalorder %s420_s18, 1  ;;  %p142_p3 = scmp.ne.s32.totalorder %s565_s13, %s561_s12 }
   0x8   : > { %s738_s20 = smov (%p37_p0, %s35_s20), 0  ;;  %p143_p5 = scmp.eq.s32.totalorder %s421_s19, 1 }
   0x9   : > { %p648_p4 = por %p137_p2, %p136_p1  ;;  %s119_s23 = ssub.s32 %s577_s16, %s738_s20 }
   0xa   : > { %p426_p6 = scmp.ge.s32.totalorder %s581_s17, 1  ;;  %p124_p7 = scmp.eq.s32.totalorder %s119_s23, 0 }
   0xb   : > { %p655_p8 = por %p143_p5, %p142_p3  ;;  %p185_p9 = scmp.lt.s32.totalorder %s581_s17, 3 }
   0xc   : > { %s661_s25 = scalar_select %p124_p7, %s569_s14, %s126_s21  }
   0xd   : > { %p186_p10 = pnand %p426_p6, %p185_p9 }
   0xe   : > { %p219_p11 = scmp.lt.s32.totalorder (!%p186_p10), %s573_s15, 1  ;;  %v583_v0 = vmov (!%p186_p10), 0.0   ;;  %vm584_vm0 = vmmov (!%p186_p10), 0   ;;  %v285_v1 = vld [vmem:[%s728_s2] sm:$0xff] (!%p186_p10)  ;;  %v585_v2 = vmov (!%p186_p10), 0   ;;  %vm241_vm1 = vcmask (!%p186_p10), 1041408  }
   0xf   : > { %189 = sbr.rel (%p186_p10) target bundleno = 261 (0x105), region = 32  ;;  %436 = vmatprep.subr.bf16.mxu0 (!%p186_p10), %v583_v0  ;;  %438 = vmatprep.mubr.msk.bf16.mxu0 (!%p186_p10), %vm584_vm0, %v583_v0  ;;  %v586_v5 = vmov (!%p186_p10), 1   ;;  %v236_v6 = vld [vmem:[%s727_s1] sm:$0xf] (!%p186_p10)  ;;  %vm237_vm2 = vcmask (!%p186_p10), 31744   ;;  %s216_s8 = sand.u32 (!%p186_p10), 1, %s565_s13  }
  0x10   : > { %501 = vset.pattern.permute.xlu0 (!%p186_p10), %v585_v2  ;;  %s427_s9 = sshll.u32 (!%p186_p10), %s216_s8, 3  ;;  %s431_s10 = sshll.u32 (!%p186_p10), %s573_s15, 7  ;;  %vm297_vm3 = vcmask (!%p186_p10), 523264  }
  0x11   : > { %288 = vperm.xlu0 (!%p186_p10), %501, %v285_v1   ;;  %s218_s11 = scalar_lea.vmem (!%p186_p10), [#allocation2], %s427_s9  ;;  %s679_s23 = scalar_lea.hbm (!%p186_p10), %s729_s3, %s431_s10 }
  0x12   : > { %s315_s18 = sshll.u32 (!%p186_p10), %s218_s11, 4  ;;  %s587_s27 = smov (!%p186_p10), [#allocation2]   ;;  %s681_s18 = int_to_ptr.vmem [resolvable:$true] %s315_s18 }
  0x13   : > { %s503_s26 = scalar_lea.vmem (!%p186_p10), %s681_s18, 128 }
  0x14   : > { %p504_p12 = scmp.ne.s32.totalorder (!%p186_p10), %s681_s18, %s503_s26 }
  0x15   : > { %502 = vset.pattern.permute.xlu0 (!%p186_p10), %v586_v5 }
  0x16   : > { %s220_s28 = scalar_select %p219_p11, %s573_s15, 1  ;;  %293 = vperm.xlu0 %502, %v285_v1  }
  0x17   : > { %s300_s15 = scalar_lea.sflag [#allocation3], %s216_s8  ;;  %p505_p13 = pnand %p504_p12, %p648_p4 }
  0x18   : > { %s428_s29 = sshll.u32 %s220_s28, 1  ;;  %s507_s28 = sshll.u32 %s587_s27, 4  ;;  %s508_s28 = int_to_ptr.vmem [resolvable:$false] %s507_s28 }
  0x19   : > { %s225_s5 = scalar_lea.vmem %s726_s0, %s428_s29  ;;  %p506_p0 = pneg %p505_p13 }
  0x1a   : > { %v235_v3 = vld [vmem:[%s225_s5] sm:$0x3]  ;;  %s509_s29 = scalar_lea.vmem %s508_s28, 256  ;;  %p510_p1 = scmp.lt.s32.totalorder %s681_s18, %s508_s28 }
  0x1b   : > { %v243_v4 = vsel %vm241_vm1, %v235_v3, 0  ;;  %p511_p2 = scmp.lt.s32.totalorder %s509_s29, %s503_s26 }
  0x1c   : > { %437 = vmatpush3.bf16.msra.mxu0 %v243_v4 }
  0x1d   : > { %p512_p3 = por %p511_p2, %p510_p1 }
  0x1f   : > { %439 = vmatmul.mubr.msk.bf16.vlgmr.msra.gmra.mrb[0].mxu0 %vm237_vm2, %v236_v6  ;;  %p513_p5 = pnand %p512_p3, %p506_p0 }
  0x90   : > { %v289_v7 = vpop.permute.xlu0 %288 }
  0x95   : > { %v294_v9 = vpop.permute.xlu0 %293 }
  0xf2   : > { %v279_v8 = vpop.f32.mrb[0].mxu0 }
  0xf3   : > { %v291_v10 = vmul.f32 %v289_v7, %v279_v8  ;;  %v440_v11 = vpop.f32.mrb[1].mxu0 }
  0xf4   : > { %v282_v12 = vpop.f32.mrb[2].mxu0 }
  0xf5   : > { %v296_v13 = vadd.f32 %v294_v9, %v291_v10  ;;  %v441_v14 = vpop.f32.mrb[3].mxu0 }
  0xf7   : > { %298 = vst.msk [vmem:[%s218_s11] sm:$0xff] %vm297_vm3, %v296_v13 }
  0xf8   : > { %516 = shalt.err (!%p513_p5)
}
  0xf9   : > { %s517_s30 = scalar_lea.hbm %s679_s23, 128  ;;  %s521_s6 = scalar_lea.hbm %s729_s3, 256 }
  0xfa   : > { %p518_p6 = scmp.ne.s32.totalorder %s679_s23, %s517_s30  ;;  %p522_p10 = scmp.lt.u32.totalorder %s679_s23, %s729_s3 }
  0xfb   : > { %p523_p11 = scmp.lt.u32.totalorder %s521_s6, %s517_s30  ;;  %p525_p13 = scmp.lt.u32.totalorder %s517_s30, %s679_s23 }
  0xfc   : > { %p519_p7 = pnand %p518_p6, %p648_p4 }
  0xfd   : > { %p524_p12 = por %p523_p11, %p522_p10 }
  0xfe   : > { %p520_p9 = pneg %p519_p7 }
  0xff   : > { %p526_p0 = por %p525_p13, %p524_p12 }
 0x101   : > { %p527_p1 = pnand %p526_p0, %p520_p9 }
 0x103   : > { %530 = shalt.err (!%p527_p1)
}
 0x104   : > { %442 = dma.vmem_to_hbm [thread:$0]  (%p648_p4), %s681_s18, 128, %s679_s23, %s300_s15  }
 0x105 PF: > { %p448_p2 = scmp.ge.s32.totalorder %s581_s17, 2  ;;  %s327_s9 = sand.u32 1, %s561_s12  }
 0x106   : > { %s328_s10 = scalar_lea.sflag [#allocation3], %s327_s9 }
 0x107   : > { %p445_p3 = pnand %p448_p2, %p655_p8 }
 0x109   : > { %556 = dma.done.wait (!%p445_p3), %s328_s10, 128  }
 0x10a   : > { %558 = vsyncadd (!%p445_p3), %s328_s10, 4294967168  ;;  %s16_s17 = sadd.s32 1, %s581_s17   ;;  %s732_s12 = smov %s565_s13 }
 0x10b   : > { %p13_p5 = scmp.ge.s32.totalorder %s16_s17, 4   ;;  %s733_s13 = smov %s569_s14 }
 0x10c   : > { %s734_s14 = smov %s661_s25  ;;  %s735_s15 = smov %s577_s16 }
 0x10d   : > { %s736_s16 = smov %s738_s20  ;;  %15 = sbr.rel (!%p13_p5) target bundleno = 4 (0x4), region = 73 }
 0x114   :  { %333 = vsyncpa [#allocation3], 1 }
 0x115   :  { %335 = vsyncpa [#allocation3 + $0x1], 1 }

</bundles_post_ra>
